<compile_context>
chip_gen: v6e
topology: v6e:2x2x1
jax: 0.10.0
libtpu: 0.0.40
codegen_flags: <defaults>
</compile_context>

<pallas_src>
import functools

import jax
import jax.numpy as jnp
from jax.experimental import pallas as pl
from jax.experimental.pallas import tpu as pltpu


def _scatter_sum_kernel(idx_ref, a_ref, out_ref, *scratch,
                        edge_tile, v_tile, n_edges, ragged_tail):
    """One (vertex-tile, feature-tile, edge-tile) step of the one-hot scatter-sum.

    idx_ref: (1, te)   int32  receiving vertex index per edge (pad cols = -1)
    a_ref:   (te, tf)  float  edge-attribute tile (ragged tail masked here)
    out_ref: (tv, tf)         output block, resident across the edge axis
    scratch: ()               out dtype f32 -> accumulate in place in out_ref
             (acc_ref,)       f32 VMEM accumulator for narrow output dtypes
    """
    acc_ref = scratch[0] if scratch else out_ref
    vi = pl.program_id(0)   # vertex-tile axis (parallel)
    k = pl.program_id(2)    # edge-tile reduction axis (arbitrary)

    @pl.when(k == 0)
    def _init():
        acc_ref[...] = jnp.zeros_like(acc_ref)

    a = a_ref[...]
    if ragged_tail:
        # The last edge tile reads past the real edge rows; zero those rows so
        # uninitialized garbage (NaN/Inf) can never reach the accumulator.
        e_ids = k * edge_tile + jax.lax.broadcasted_iota(
            jnp.int32, (edge_tile, 1), 0)
        a = jnp.where(e_ids < n_edges, a, 0)

    recv = idx_ref[0, :]                                               # (te,)
    rows = vi * v_tile + jax.lax.broadcasted_iota(jnp.int32, (v_tile, 1), 0)
    # one_hot[v, e] = 1 iff edge e is received by (global) vertex row v.
    # Built in A's dtype (bf16 stays bf16 -> native MXU rate; 0/1 exact).
    one_hot = (rows == recv[None, :]).astype(a.dtype)                  # (tv, te)
    acc_ref[...] += jnp.dot(one_hot, a, preferred_element_type=jnp.float32)

    if scratch:  # narrow output dtype: cast once on the last reduction step
        @pl.when(k == pl.num_programs(2) - 1)
        def _finalize():
            out_ref[...] = acc_ref[...].astype(out_ref.dtype)


def _pick_feature_tile(f_pad, max_tf=512):
    """f_pad is a multiple of 128.  Pick a multiple-of-128 divisor <= max_tf,
    preferring >= 2 feature blocks (megacore parallelism on v7x)."""
    if f_pad <= 128:
        return f_pad
    tf = min(max_tf, f_pad // 2)
    tf -= tf % 128
    tf = max(tf, 128)
    while f_pad % tf != 0:
        tf -= 128
    return tf


def edge_aggregation_sum(edgeij_pair, A_ij, n_vertices, *,
                         edge_tile=1024, max_feature_tile=512,
                         max_vertex_block=1024):
    """Pallas scatter-sum: cbar_i[v] = sum_{e: edgeij_pair[0, e] == v} A_ij[e].

    Note: receiver indices outside [0, n_vertices) are silently dropped,
    matching jnp .at[].add semantics under jit.
    """
    E, F = A_ij.shape
    V = int(n_vertices)
    out_dtype = A_ij.dtype

    if E == 0 or V == 0:
        return jnp.zeros((V, F), dtype=out_dtype)

    # --- feature axis: lane-dense output (pad F up to a multiple of 128) -----
    f_pad = pl.cdiv(F, 128) * 128
    if f_pad != F:
        A_ij = jnp.pad(A_ij, ((0, 0), (0, f_pad - F)))
    tf = _pick_feature_tile(f_pad, max_feature_tile)

    # --- edge axis: tile; never copy the A stream for large E ----------------
    edge_tile = max(128, (int(edge_tile) // 128) * 128)
    edge_tile = min(edge_tile, pl.cdiv(E, 128) * 128)
    e_pad = pl.cdiv(E, edge_tile) * edge_tile

    recv = edgeij_pair[0].astype(jnp.int32).reshape(1, E)
    if e_pad != E:  # pad only the tiny index row; -1 matches no vertex row
        recv = jnp.pad(recv, ((0, 0), (0, e_pad - E)), constant_values=-1)

    if E < edge_tile:
        # Tiny edge count: zero-pad A outright (single-tile copy, negligible);
        # zero rows contribute nothing, no in-kernel mask needed.
        A_ij = jnp.pad(A_ij, ((0, e_pad - E), (0, 0)))
        ragged_tail = False
    else:
        # Large E: mask the ragged last tile inside the kernel instead of
        # materializing a full padded copy of the edge stream in HBM.
        ragged_tail = (E % edge_tile != 0)

    # --- vertex axis: single resident block for small V, tiled for large V ---
    if V > max_vertex_block:
        v_tile = 512
        v_pad = pl.cdiv(V, v_tile) * v_tile
    else:
        v_tile = V
        v_pad = V

    grid = (v_pad // v_tile, f_pad // tf, e_pad // edge_tile)

    accumulate_in_out = out_dtype == jnp.float32
    scratch_shapes = ([] if accumulate_in_out
                      else [pltpu.VMEM((v_tile, tf), jnp.float32)])

    a_item = jnp.dtype(A_ij.dtype).itemsize
    o_item = jnp.dtype(out_dtype).itemsize
    vmem_bytes = (2 * edge_tile * tf * a_item          # double-buffered A tile
                  + 2 * edge_tile * 4                  # double-buffered idx tile
                  + 2 * v_tile * tf * o_item           # output block
                  + (0 if accumulate_in_out else v_tile * tf * 4))
    vmem_limit = int(min(max(2 * vmem_bytes, 32 << 20), 64 << 20))

    cost = pl.CostEstimate(
        flops=2 * v_pad * e_pad * f_pad,
        transcendentals=0,
        bytes_accessed=(grid[0] * (E * f_pad * a_item + e_pad * 4)
                        + v_pad * f_pad * o_item),
    )

    kernel = functools.partial(
        _scatter_sum_kernel,
        edge_tile=edge_tile, v_tile=v_tile, n_edges=E, ragged_tail=ragged_tail)

    out = pl.pallas_call(
        kernel,
        out_shape=jax.ShapeDtypeStruct((v_pad, f_pad), out_dtype),
        grid_spec=pltpu.PrefetchScalarGridSpec(
            num_scalar_prefetch=0,
            grid=grid,
            in_specs=[
                # receiver row only: (1, te) int32 tile
                pl.BlockSpec((1, edge_tile), lambda vi, j, k: (0, k)),
                # edge-attribute stream tile
                pl.BlockSpec((edge_tile, tf), lambda vi, j, k: (k, j)),
            ],
            out_specs=pl.BlockSpec((v_tile, tf), lambda vi, j, k: (vi, j)),
            scratch_shapes=scratch_shapes,
        ),
        compiler_params=pltpu.CompilerParams(
            # vertex/feature tiles are independent (megacore-parallel on v7x);
            # the trailing edge axis is the sequential reduction.
            dimension_semantics=("parallel", "parallel", "arbitrary"),
            vmem_limit_bytes=vmem_limit,
        ),
        cost_estimate=cost,
    )(recv, A_ij)

    if (v_pad, f_pad) != (V, F):
        out = out[:V, :F]
    return out


def vertex_update(vertex_attr, edgeij_pair, edge_attr, g=None, batch=None):
    """Forward pass of VertexUpdate: v_i = cbar_i = edge-aggregation(A_ij)."""
    A_ij = edge_attr
    n_vertices = vertex_attr.shape[0]
    cbar_i = edge_aggregation_sum(edgeij_pair, A_ij, n_vertices)
    vi = cbar_i
    return vi


if __name__ == "__main__":
    # ---- Test 1: f32, small graph, F multiple of 128 (in-place f32 accumulation)
    k1, k2, k3 = jax.random.split(jax.random.PRNGKey(0), 3)
    V, Dv, E, F = 16, 8, 300, 128
    vertex_attr = jax.random.normal(k1, (V, Dv), dtype=jnp.float32)
    edge_attr = jax.random.normal(k2, (E, F), dtype=jnp.float32)
    # edgeij_pair[0] = receiving vertex index, edgeij_pair[1] = sending vertex
    edgeij_pair = jax.random.randint(k3, (2, E), 0, V, dtype=jnp.int32)
    batch = jnp.zeros((V,), dtype=jnp.int32)

    out = vertex_update(vertex_attr, edgeij_pair, edge_attr, None, batch)
    out = jax.block_until_ready(out)
    ref = jnp.zeros((V, F), jnp.float32).at[edgeij_pair[0]].add(edge_attr)
    assert out.shape == (V, F)
    assert jnp.allclose(out, ref, atol=1e-4, rtol=1e-4)

    # ---- Test 2: bf16, ragged E (> edge_tile) and ragged F
    #      exercises the in-kernel tail mask, the f32 scratch accumulator and
    #      the lane-dense F padding / output slice.
    k4, k5, k6 = jax.random.split(jax.random.PRNGKey(1), 3)
    V2, E2, F2 = 20, 1300, 100
    vertex_attr2 = jax.random.normal(k4, (V2, 4), dtype=jnp.float32)
    edge_attr2 = jax.random.normal(k5, (E2, F2), dtype=jnp.float32).astype(jnp.bfloat16)
    edgeij_pair2 = jax.random.randint(k6, (2, E2), 0, V2, dtype=jnp.int32)

    out2 = vertex_update(vertex_attr2, edgeij_pair2, edge_attr2, None, None)
    out2 = jax.block_until_ready(out2)
    ref2 = jnp.zeros((V2, F2), jnp.float32).at[edgeij_pair2[0]].add(
        edge_attr2.astype(jnp.float32))
    assert out2.shape == (V2, F2)
    assert out2.dtype == jnp.bfloat16
    assert jnp.allclose(out2.astype(jnp.float32), ref2, atol=1e-1, rtol=2e-2)

    print("KERNEL_OK")
</pallas_src>

<mosaic_0001>
module attributes {stable_mosaic.version = 11 : i64} {
  func.func @_scatter_sum_kernel(%arg0: i32, %arg1: i32, %arg2: i32, %arg3: memref<1x384xi32, #tpu.memory_space<vmem>>, %arg4: memref<384x128xf32, #tpu.memory_space<vmem>>, %arg5: memref<16x128xf32, #tpu.memory_space<vmem>>) attributes {dimension_semantics = [#tpu.dimension_semantics<parallel>, #tpu.dimension_semantics<parallel>, #tpu.dimension_semantics<arbitrary>], iteration_bounds = array<i64: 1, 1, 1>, scalar_prefetch = 0 : i64, scratch_operands = 0 : i64, tpu.core_type = #tpu.core_type<tc>, window_params = [{transform_indices = @transform_0, window_bounds = array<i64: 1, 384>}, {transform_indices = @transform_1, window_bounds = array<i64: 384, 128>}, {transform_indices = @transform_2, window_bounds = array<i64: 16, 128>}]} {
    %c0_i32 = arith.constant 0 : i32
    %0 = arith.cmpi eq, %arg2, %c0_i32 : i32
    %1 = arith.extui %0 : i1 to i32
    %c0_i32_0 = arith.constant 0 : i32
    %2 = arith.cmpi ne, %1, %c0_i32_0 : i32
    scf.if %2 {
      %cst_8 = arith.constant 0.000000e+00 : f32
      %20 = vector.broadcast %cst_8 : f32 to vector<16x128xf32>
      %c0_9 = arith.constant 0 : index
      %c0_10 = arith.constant 0 : index
      %21 = vector.load %arg5[%c0_9, %c0_10] : memref<16x128xf32, #tpu.memory_space<vmem>>, vector<16x128xf32>
      tpu.vector_store %arg5[%c0_9, %c0_10], %20 {strides = array<i32>} : memref<16x128xf32, #tpu.memory_space<vmem>>, vector<16x128xf32>,
    } else {
    }
    %c0 = arith.constant 0 : index
    %c0_1 = arith.constant 0 : index
    %3 = vector.load %arg4[%c0, %c0_1] : memref<384x128xf32, #tpu.memory_space<vmem>>, vector<384x128xf32>
    %c0_2 = arith.constant 0 : index
    %c0_3 = arith.constant 0 : index
    %4 = vector.load %arg3[%c0_2, %c0_3] : memref<1x384xi32, #tpu.memory_space<vmem>>, vector<1x384xi32>
    %5 = vector.shape_cast %4 : vector<1x384xi32> to vector<384xi32>
    %c16_i32 = arith.constant 16 : i32
    %6 = arith.muli %arg0, %c16_i32 : i32
    %7 = tpu.iota {dimensions = array<i32: 0>} : vector<16x1xi32>
    %8 = vector.broadcast %6 : i32 to vector<16x1xi32>
    %9 = arith.addi %8, %7 : vector<16x1xi32>
    %10 = vector.shape_cast %5 : vector<384xi32> to vector<1x384xi32>
    %11 = vector.broadcast %9 : vector<16x1xi32> to vector<16x384xi32>
    %12 = vector.broadcast %10 : vector<1x384xi32> to vector<16x384xi32>
    %13 = arith.cmpi eq, %11, %12 : vector<16x384xi32>
    %14 = arith.extui %13 : vector<16x384xi1> to vector<16x384xi32>
    %15 = arith.sitofp %14 : vector<16x384xi32> to vector<16x384xf32>
    %c0_4 = arith.constant 0 : index
    %c0_5 = arith.constant 0 : index
    %16 = vector.load %arg5[%c0_4, %c0_5] : memref<16x128xf32, #tpu.memory_space<vmem>>, vector<16x128xf32>
    %cst = arith.constant dense<0.000000e+00> : vector<16x128xf32>
    %17 = tpu.matmul %15, %3, %cst {dimension_numbers = #tpu.dot_dimension_numbers<[1], [0], [0], [1], [0, 0, 1, 1], [], []>} : vector<16x384xf32>, vector<384x128xf32>, vector<16x128xf32> -> vector<16x128xf32>
    %18 = arith.addf %16, %17 : vector<16x128xf32>
    %c0_6 = arith.constant 0 : index
    %c0_7 = arith.constant 0 : index
    %19 = vector.load %arg5[%c0_6, %c0_7] : memref<16x128xf32, #tpu.memory_space<vmem>>, vector<16x128xf32>
    tpu.vector_store %arg5[%c0_6, %c0_7], %18 {strides = array<i32>} : memref<16x128xf32, #tpu.memory_space<vmem>>, vector<16x128xf32>,
    return
  }
  func.func @transform_0(%arg0: i32, %arg1: i32, %arg2: i32) -> (i32, i32) {
    %c0_i32 = arith.constant 0 : i32
    %c0_i32_0 = arith.constant 0 : i32
    return %c0_i32, %arg2 : i32, i32
  }
  func.func @transform_1(%arg0: i32, %arg1: i32, %arg2: i32) -> (i32, i32) {
    %c0_i32 = arith.constant 0 : i32
    return %arg2, %arg1 : i32, i32
  }
  func.func @transform_2(%arg0: i32, %arg1: i32, %arg2: i32) -> (i32, i32) {
    %c0_i32 = arith.constant 0 : i32
    return %arg0, %arg1 : i32, i32
  }
}

</mosaic_0001>

<bundles_post_ra>
// kernel: tpu_custom_call.1
= control target key start
LH: loop header
LB: loop body
LE: loop exit
PB: predicated region body
PF: predicated region fallthrough
CT: control target
= control target key end

     0   :  { %7 = vsyncpa [#allocation3], 0  ;;  %s525_s0 = inlined_call_operand.hbm [shape: s32[1,384], index: 0, kind: input, shape index: {}]   ;;  %s526_s1 = inlined_call_operand.hbm [shape: f32[384,128], index: 1, kind: input, shape index: {}]   ;;  %s527_s2 = inlined_call_operand.hbm [shape: f32[16,128], index: 2, kind: output, shape index: {}]  }
   0x1   :  { %8 = vsyncpa [#allocation6], 0 }
   0x2   :  { %9 = vsyncpa [#allocation4], 0  ;;  %s480_s9 = smov [#allocation2]   ;;  %s481_s11 = smov [#allocation5]  }
   0x3   :  { %s16_s10 = sshll.u32 %s480_s9, 4  ;;  %s25_s12 = sshll.u32 %s481_s11, 4  ;;  %s17_s10 = int_to_ptr.vmem [resolvable:$true] %s16_s10  ;;  %s26_s12 = int_to_ptr.vmem [resolvable:$true] %s25_s12 }
   0x4   :  { %s422_s13 = scalar_lea.vmem %s17_s10, 48  ;;  %s426_s14 = scalar_lea.vmem %s17_s10, 64 }
   0x5   :  { %p423_p0 = scmp.ne.s32.totalorder %s17_s10, %s422_s13  ;;  %p427_p1 = scmp.lt.s32.totalorder %s17_s10, %s17_s10 }
   0x6   :  { %p428_p2 = scmp.lt.s32.totalorder %s426_s14, %s422_s13 }
   0x8   :  { %p429_p3 = por %p428_p2, %p427_p1 }
   0xa   :  { %p430_p4 = pnand %p429_p3, %p423_p0 }
   0xc   :  { %433 = shalt.err (!%p430_p4)
}
   0xd   :  { %19 = dma.hbm_to_vmem [thread:$0]  %s525_s0, 48, %s17_s10, [#allocation3]  }
   0xe   :  { %s442_s17 = scalar_lea.vmem %s26_s12, 6144  ;;  %p447_p6 = scmp.lt.s32.totalorder %s26_s12, %s26_s12 }
   0xf   :  { %p443_p5 = scmp.ne.s32.totalorder %s26_s12, %s442_s17  ;;  %p448_p7 = scmp.lt.s32.totalorder %s442_s17, %s442_s17 }
  0x11   :  { %p449_p8 = por %p448_p7, %p447_p6 }
  0x13   :  { %p450_p9 = pnand %p449_p8, %p443_p5 }
  0x15   :  { %453 = shalt.err (!%p450_p9)
}
  0x16   :  { %s482_s18 = smov 128   ;;  %s483_s19 = smov 8  }
  0x17   :  { %31 = dma.hbm_to_vmem [thread:$0]  %s526_s1, 6144, %s26_s12, [#allocation6], %s482_s18, %s482_s18, %s483_s19  }
  0x18   :  { %474 = dma.done.wait [#allocation3], 48  }
  0x19   :  { %475 = vsyncadd [#allocation3], 4294967248 }
  0x1a   :  { %476 = dma.done.wait [#allocation6], 6144  }
  0x1b   :  { %477 = vsyncadd [#allocation6], 4294961152  ;;  %v75_v0 = vld [vmem:[#allocation5 + $0xf8] sm:$0xff]  ;;  %v74_v2 = vld [vmem:[#allocation5 + $0xf0] sm:$0xff]  ;;  %v94_v22 = vlaneseq  ;;  %v484_v58 = vmov 1.0   ;;  %s485_s0 = smov [#allocation7]  }
  0x1c   :  { %v59_v1 = vld [vmem:[#allocation5 + $0x78] sm:$0xff]  ;;  %316 = vmatprep.subr.mxu0 %v75_v0  ;;  %v58_v4 = vld [vmem:[#allocation5 + $0x70] sm:$0xff]  ;;  %v73_v5 = vld [vmem:[#allocation5 + $0xe8] sm:$0xff]  ;;  %s291_s1 = sshll.u32 %s485_s0, 4  ;;  %s292_s1 = int_to_ptr.vmem [resolvable:$true] %s291_s1 }
  0x1d   :  { %v91_v3 = vld [vmem:[#allocation5 + $0x178] sm:$0xff]  ;;  %317 = vmatpush3.msra.mxu0 %v59_v1  ;;  %v90_v6 = vld [vmem:[#allocation5 + $0x170] sm:$0xff]  ;;  %v57_v7 = vld [vmem:[#allocation5 + $0x68] sm:$0xff]  ;;  %v510_v29 = vshrl.u32 %v94_v22, 7  ;;  %s454_s22 = scalar_lea.vmem %s292_s1, 256  ;;  %p459_p11 = scmp.lt.s32.totalorder %s292_s1, %s292_s1 }
  0x1e   :  { %372 = vmatprep.subr.mxu1 %v91_v3  ;;  %318 = vmatprep.subr.mxu0 %v74_v2  ;;  %v89_v8 = vld [vmem:[#allocation5 + $0x168] sm:$0xff]  ;;  %v72_v9 = vld [vmem:[#allocation5 + $0xe0] sm:$0xff]  ;;  %v71_v12 = vld [vmem:[#allocation5 + $0xd8] sm:$0xff]  ;;  %p455_p10 = scmp.ne.s32.totalorder %s292_s1, %s454_s22  ;;  %p460_p12 = scmp.lt.s32.totalorder %s454_s22, %s454_s22 }
  0x1f   :  { %373 = vmatpush3.msra.mxu1 %v91_v3  ;;  %319 = vmatpush3.msra.mxu0 %v58_v4  ;;  %v56_v10 = vld [vmem:[#allocation5 + $0x60] sm:$0xff]  ;;  %v55_v13 = vld [vmem:[#allocation5 + $0x58] sm:$0xff]  ;;  %v70_v15 = vld [vmem:[#allocation5 + $0xd0] sm:$0xff]  ;;  %v106_v36 = vsub.s32 1, %v510_v29  ;;  %v102_v41 = vsub.s32 0, %v510_v29  ;;  %v110_v44 = vsub.s32 2, %v510_v29 }
  0x20   :  { %374 = vmatprep.subr.mxu1 %v90_v6  ;;  %320 = vmatprep.subr.mxu0 %v73_v5  ;;  %v88_v11 = vld [vmem:[#allocation5 + $0x160] sm:$0xff]  ;;  %v87_v14 = vld [vmem:[#allocation5 + $0x158] sm:$0xff]  ;;  %v54_v16 = vld [vmem:[#allocation5 + $0x50] sm:$0xff]  ;;  %v96_v55 = vadd.s32 8, %v510_v29  ;;  %p461_p13 = por %p460_p12, %p459_p11 }
  0x21   :  { %375 = vmatpush3.msra.mxu1 %v90_v6  ;;  %321 = vmatpush3.msra.mxu0 %v57_v7  ;;  %v86_v17 = vld [vmem:[#allocation5 + $0x150] sm:$0xff]  ;;  %v69_v18 = vld [vmem:[#allocation5 + $0xc8] sm:$0xff]  ;;  %v68_v21 = vld [vmem:[#allocation5 + $0xc0] sm:$0xff] }
  0x22   :  { %376 = vmatprep.subr.mxu1 %v89_v8  ;;  %322 = vmatprep.subr.mxu0 %v72_v9  ;;  %v53_v19 = vld [vmem:[#allocation5 + $0x48] sm:$0xff]  ;;  %v52_v23 = vld [vmem:[#allocation5 + $0x40] sm:$0xff]  ;;  %v67_v25 = vld [vmem:[#allocation5 + $0xb8] sm:$0xff]  ;;  %p462_p0 = pnand %p461_p13, %p455_p10 }
  0x23   :  { %377 = vmatpush3.msra.mxu1 %v89_v8  ;;  %323 = vmatpush3.msra.mxu0 %v56_v10  ;;  %v85_v20 = vld [vmem:[#allocation5 + $0x148] sm:$0xff]  ;;  %v84_v24 = vld [vmem:[#allocation5 + $0x140] sm:$0xff]  ;;  %v51_v26 = vld [vmem:[#allocation5 + $0x38] sm:$0xff] }
  0x24   :  { %378 = vmatprep.subr.mxu1 %v88_v11  ;;  %324 = vmatprep.subr.mxu0 %v71_v12  ;;  %v83_v27 = vld [vmem:[#allocation5 + $0x138] sm:$0xff]  ;;  %v66_v28 = vld [vmem:[#allocation5 + $0xb0] sm:$0xff]  ;;  %v65_v32 = vld [vmem:[#allocation5 + $0xa8] sm:$0xff] }
  0x25   :  { %379 = vmatpush3.msra.mxu1 %v88_v11  ;;  %325 = vmatpush3.msra.mxu0 %v55_v13  ;;  %v50_v30 = vld [vmem:[#allocation5 + $0x30] sm:$0xff]  ;;  %v49_v33 = vld [vmem:[#allocation5 + $0x28] sm:$0xff]  ;;  %v64_v35 = vld [vmem:[#allocation5 + $0xa0] sm:$0xff] }
  0x26   :  { %380 = vmatprep.subr.mxu1 %v87_v14  ;;  %326 = vmatprep.subr.mxu0 %v70_v15  ;;  %v82_v31 = vld [vmem:[#allocation5 + $0x130] sm:$0xff]  ;;  %v81_v34 = vld [vmem:[#allocation5 + $0x128] sm:$0xff]  ;;  %v48_v37 = vld [vmem:[#allocation5 + $0x20] sm:$0xff] }
  0x27   :  { %381 = vmatpush3.msra.mxu1 %v87_v14  ;;  %327 = vmatpush3.msra.mxu0 %v54_v16  ;;  %v80_v38 = vld [vmem:[#allocation5 + $0x120] sm:$0xff]  ;;  %v92_v39 = vld [vmem:[#allocation2] sm:$0x7]  ;;  %v62_v45 = vld [vmem:[#allocation5 + $0x90] sm:$0xff] }
  0x28   :  { %382 = vmatprep.subr.mxu1 %v86_v17  ;;  %328 = vmatprep.subr.mxu0 %v69_v18  ;;  %v63_v40 = vld [vmem:[#allocation5 + $0x98] sm:$0xff]  ;;  %v107_v46 = vrot.slane %v92_v39, %v106_v36  ;;  %v46_v47 = vld [vmem:[#allocation5 + $0x10] sm:$0xff]  ;;  %v61_v49 = vld [vmem:[#allocation5 + $0x88] sm:$0xff]  ;;  %v103_v50 = vrot.slane %v92_v39, %v102_v41  ;;  %v111_v53 = vrot.slane %v92_v39, %v110_v44 }
  0x29   :  { %383 = vmatpush3.msra.mxu1 %v86_v17  ;;  %329 = vmatpush3.msra.mxu0 %v53_v19  ;;  %v47_v42 = vld [vmem:[#allocation5 + $0x18] sm:$0xff]  ;;  %v78_v48 = vld [vmem:[#allocation5 + $0x110] sm:$0xff]  ;;  %v45_v51 = vld [vmem:[#allocation5 + $0x8] sm:$0xff] }
  0x2a   :  { %384 = vmatprep.subr.mxu1 %v85_v20  ;;  %330 = vmatprep.subr.mxu0 %v68_v21  ;;  %v79_v43 = vld [vmem:[#allocation5 + $0x118] sm:$0xff]  ;;  %v77_v52 = vld [vmem:[#allocation5 + $0x108] sm:$0xff]  ;;  %v60_v54 = vld [vmem:[#allocation5 + $0x80] sm:$0xff]  ;;  %vm113_vm0 = vcmp.eq.s32.totalorder %v510_v29, %v107_v46  ;;  %vm112_vm1 = vcmp.eq.s32.totalorder %v510_v29, %v103_v50  ;;  %vm114_vm2 = vcmp.eq.s32.totalorder %v510_v29, %v111_v53 }
  0x2b   :  { %385 = vmatpush3.msra.mxu1 %v85_v20  ;;  %331 = vmatpush3.msra.mxu0 %v52_v23  ;;  %v44_v56 = vld [vmem:[#allocation5] sm:$0xff]  ;;  %vm117_vm3 = vcmp.eq.s32.totalorder %v96_v55, %v111_v53  ;;  %vm116_vm4 = vcmp.eq.s32.totalorder %v96_v55, %v107_v46  ;;  %vm115_vm5 = vcmp.eq.s32.totalorder %v96_v55, %v103_v50 }
  0x2c   :  { %386 = vmatprep.subr.mxu1 %v84_v24  ;;  %332 = vmatprep.subr.mxu0 %v67_v25  ;;  %v76_v57 = vld [vmem:[#allocation5 + $0x100] sm:$0xff] }
  0x2d   :  { %387 = vmatpush3.msra.mxu1 %v84_v24  ;;  %333 = vmatpush3.msra.mxu0 %v51_v26 }
  0x2e   :  { %388 = vmatprep.subr.mxu1 %v83_v27  ;;  %334 = vmatprep.subr.mxu0 %v66_v28 }
  0x2f   :  { %389 = vmatpush3.msra.mxu1 %v83_v27  ;;  %335 = vmatpush3.msra.mxu0 %v50_v30 }
  0x30   :  { %390 = vmatprep.subr.mxu1 %v82_v31  ;;  %336 = vmatprep.subr.mxu0 %v65_v32 }
  0x31   :  { %391 = vmatpush3.msra.mxu1 %v82_v31  ;;  %337 = vmatpush3.msra.mxu0 %v49_v33 }
  0x32   :  { %392 = vmatprep.subr.mxu1 %v81_v34  ;;  %338 = vmatprep.subr.mxu0 %v64_v35 }
  0x33   :  { %393 = vmatpush3.msra.mxu1 %v81_v34  ;;  %339 = vmatpush3.msra.mxu0 %v48_v37 }
  0x34   :  { %394 = vmatprep.subr.mxu1 %v80_v38  ;;  %340 = vmatprep.subr.mxu0 %v63_v40 }
  0x35   :  { %395 = vmatpush3.msra.mxu1 %v80_v38  ;;  %341 = vmatpush3.msra.mxu0 %v47_v42 }
  0x36   :  { %396 = vmatprep.subr.mxu1 %v79_v43  ;;  %342 = vmatprep.subr.mxu0 %v62_v45 }
  0x37   :  { %397 = vmatpush3.msra.mxu1 %v79_v43  ;;  %343 = vmatpush3.msra.mxu0 %v46_v47 }
  0x38   :  { %398 = vmatprep.subr.mxu1 %v78_v48  ;;  %344 = vmatprep.subr.mxu0 %v61_v49 }
  0x39   :  { %399 = vmatpush3.msra.mxu1 %v78_v48  ;;  %345 = vmatpush3.msra.mxu0 %v45_v51 }
  0x3a   :  { %400 = vmatprep.subr.mxu1 %v77_v52  ;;  %346 = vmatprep.subr.mxu0 %v60_v54 }
  0x3b   :  { %310 = vmatprep.mubr.msk.f32.mxu0 %vm113_vm0, %v484_v58  ;;  %347 = vmatpush3.msra.mxu0 %v44_v56 }
  0x3c   :  { %401 = vmatpush3.msra.mxu1 %v77_v52  ;;  %311 = vmatmul.mubr.msk.f32.vlgmr.msra.gmra.mxu0 %vm112_vm1, %v484_v58 }
  0x3d   :  { %402 = vmatprep.subr.mxu1 %v76_v57  ;;  %404 = vmatprep.mubr.msk.f32.mxu1 %vm114_vm2, %v484_v58 }
  0x3e   :  { %403 = vmatpush3.msra.mxu1 %v76_v57  ;;  %312 = vmatprep.mubr.msk.f32.mxu0 %vm116_vm4, %v484_v58 }
  0x3f   :  { %405 = vmatmul.mubr.msk.f32.vlgmr.msra.gmra.mxu1 %vm117_vm3, %v484_v58 }
  0x40   :  { %313 = vmatmul.mubr.msk.f32.gmra.mxu0 %vm115_vm5, %v484_v58 }
  0xfc   :  { %v348_v59 = vpop.f32.mrf.mxu0 }
  0xfe   :  { %v349_v60 = vpop.f32.mrf.mxu0 }
  0xff   :  { %v406_v61 = vpop.f32.mrf.mxu1  ;;  %v350_v62 = vadd.f32 %v349_v60, %v348_v59 }
 0x100   :  { %v351_v63 = vpop.f32.mrf.mxu0 }
 0x101   :  { %v273_v0 = vpop.f32.mrf.mxu1 }
 0x102   :  { %v274_v1 = vadd.f32 %v350_v62, %v273_v0  ;;  %v352_v2 = vpop.f32.mrf.mxu0 }
 0x103   :  { %v353_v3 = vadd.f32 %v352_v2, %v351_v63 }
 0x104   :  { %284 = vst [vmem:[#allocation7] sm:$0xff] %v274_v1 }
 0x105   :  { %v279_v4 = vadd.f32 %v406_v61, %v353_v3 }
 0x107   :  { %285 = vst [vmem:[#allocation7 + $0x8] sm:$0xff] %v279_v4 }
 0x108   :  { %465 = shalt.err (!%p462_p0)
}
 0x109   :  { %297 = dma.vmem_to_hbm [thread:$0]  %s292_s1, 256, %s527_s2, [#allocation4], %s482_s18, %s482_s18, %s483_s19  }
 0x10a   :  { %478 = dma.done.wait [#allocation4], 256  }
 0x10b   :  { %479 = vsyncadd [#allocation4], 4294967040 }
 0x10c   :  { %301 = vsyncpa [#allocation3], 1 }
 0x10d   :  { %302 = vsyncpa [#allocation6], 1 }
 0x10e   :  { %303 = vsyncpa [#allocation4], 1 }

</bundles_post_ra>
